<compile_context>
chip_gen: v7x
topology: tpu7x:2x2x1
jax: 0.10.0
libtpu: 0.0.40
codegen_flags: <defaults>
</compile_context>

<pallas_src>
import jax
import jax.numpy as jnp
from jax.experimental import pallas as pl
from jax.experimental.pallas import tpu as pltpu


def _log_softmax_kernel(x_ref, o_ref):
    # Block: (TM, H).  H (lane axis) is whole, so the row reduction is block-local.
    x = x_ref[...].astype(jnp.float32)
    m = jnp.max(x, axis=-1, keepdims=True)            # numerical stability
    s = x - m
    lse = jnp.log(jnp.sum(jnp.exp(s), axis=-1, keepdims=True))
    o_ref[...] = (s - lse).astype(o_ref.dtype)


def _choose_row_tile(n_rows, hidden, in_bytes, out_bytes,
                     target_block_bytes=1 << 20, vmem_budget=32 << 20):
    """Row tile TM: multiple of 8, double-buffered in+out blocks fit the budget."""
    per_row = hidden * (in_bytes + out_bytes)          # one row of the in + out block
    tm_vmem = vmem_budget // (2 * per_row)             # 2x: double buffering
    tm_target = target_block_bytes // max(1, hidden * in_bytes)
    tm = max(8, min(tm_vmem, tm_target))
    tm = max(8, (tm // 8) * 8)
    n_pad8 = ((n_rows + 7) // 8) * 8                   # never exceed (8-padded) rows
    return min(tm, n_pad8)


def functional_module_forward(x: jax.Array) -> jax.Array:
    """Pallas implementation of FunctionalModule(log_softmax(dim=-1)).forward."""
    orig_shape = x.shape
    H = orig_shape[-1]
    x2 = x.reshape(-1, H)
    N = x2.shape[0]

    in_bytes = jnp.dtype(x.dtype).itemsize
    out_bytes = in_bytes
    TM = _choose_row_tile(N, H, in_bytes, out_bytes)

    # Pad the row axis to a multiple of TM.  Zero rows are harmless: each row's
    # log_softmax is independent; padded rows are sliced off afterwards.
    n_pad = (-N) % TM
    if n_pad:
        x2 = jnp.pad(x2, ((0, n_pad), (0, 0)))
    n_rows = N + n_pad

    cost = pl.CostEstimate(
        flops=5 * N * H,
        transcendentals=N * H + N,
        bytes_accessed=N * H * (in_bytes + out_bytes),
    )

    out = pl.pallas_call(
        _log_softmax_kernel,
        out_shape=jax.ShapeDtypeStruct((n_rows, H), x.dtype),
        grid_spec=pltpu.PrefetchScalarGridSpec(
            num_scalar_prefetch=0,
            grid=(n_rows // TM,),
            in_specs=[pl.BlockSpec((TM, H), lambda i: (i, 0))],
            out_specs=pl.BlockSpec((TM, H), lambda i: (i, 0)),
        ),
        compiler_params=pltpu.CompilerParams(
            dimension_semantics=("parallel",),
            vmem_limit_bytes=64 * 1024 * 1024,
        ),
        cost_estimate=cost,
    )(x2)

    if n_pad:
        out = out[:N]
    return out.reshape(orig_shape)


if __name__ == "__main__":
    key = jax.random.PRNGKey(0)

    # Primary small shape consistent with the forward: batch=2, seq=8, hidden=32.
    x = jax.random.normal(key, (2, 8, 32), dtype=jnp.float32)
    out = functional_module_forward(x)
    out = jax.block_until_ready(out)
    ref = jax.nn.log_softmax(x, axis=-1)
    assert out.shape == ref.shape and out.dtype == ref.dtype
    assert jnp.allclose(out, ref, atol=1e-5, rtol=1e-5)

    # Second shape exercises the row-padding path (N not a multiple of TM).
    x2 = jax.random.normal(jax.random.PRNGKey(1), (3, 7, 128), dtype=jnp.float32)
    out2 = jax.block_until_ready(functional_module_forward(x2))
    ref2 = jax.nn.log_softmax(x2, axis=-1)
    assert jnp.allclose(out2, ref2, atol=1e-5, rtol=1e-5)

    print("KERNEL_OK")
</pallas_src>

<mosaic_0001>
module attributes {stable_mosaic.version = 11 : i64} {
  func.func @_log_softmax_kernel(%arg0: i32, %arg1: memref<16x32xf32, #tpu.memory_space<vmem>>, %arg2: memref<16x32xf32, #tpu.memory_space<vmem>>) attributes {dimension_semantics = [#tpu.dimension_semantics<parallel>], iteration_bounds = array<i64: 1>, scalar_prefetch = 0 : i64, scratch_operands = 0 : i64, tpu.core_type = #tpu.core_type<tc>, window_params = [{transform_indices = @transform_0, window_bounds = array<i64: 16, 32>}, {transform_indices = @transform_1, window_bounds = array<i64: 16, 32>}]} {
    %c0 = arith.constant 0 : index
    %c0_0 = arith.constant 0 : index
    %0 = vector.load %arg1[%c0, %c0_0] : memref<16x32xf32, #tpu.memory_space<vmem>>, vector<16x32xf32>
    %cst = arith.constant dense<0xFF800000> : vector<16xf32>
    %1 = vector.multi_reduction <maximumf>, %0, %cst [1] : vector<16x32xf32> to vector<16xf32>
    %2 = vector.shape_cast %1 : vector<16xf32> to vector<16x1xf32>
    %3 = vector.broadcast %2 : vector<16x1xf32> to vector<16x32xf32>
    %4 = arith.subf %0, %3 : vector<16x32xf32>
    %5 = math.exp %4 : vector<16x32xf32>
    %cst_1 = arith.constant dense<0.000000e+00> : vector<16xf32>
    %6 = vector.multi_reduction <add>, %5, %cst_1 [1] : vector<16x32xf32> to vector<16xf32>
    %7 = vector.shape_cast %6 : vector<16xf32> to vector<16x1xf32>
    %8 = math.log %7 : vector<16x1xf32>
    %9 = vector.broadcast %8 : vector<16x1xf32> to vector<16x32xf32>
    %10 = arith.subf %4, %9 : vector<16x32xf32>
    %c0_2 = arith.constant 0 : index
    %c0_3 = arith.constant 0 : index
    %11 = vector.load %arg2[%c0_2, %c0_3] : memref<16x32xf32, #tpu.memory_space<vmem>>, vector<16x32xf32>
    tpu.vector_store %arg2[%c0_2, %c0_3], %10 {strides = array<i32>} : memref<16x32xf32, #tpu.memory_space<vmem>>, vector<16x32xf32>,
    return
  }
  func.func @transform_0(%arg0: i32) -> (i32, i32) {
    %c0_i32 = arith.constant 0 : i32
    %c0_i32_0 = arith.constant 0 : i32
    return %arg0, %c0_i32 : i32, i32
  }
  func.func @transform_1(%arg0: i32) -> (i32, i32) {
    %c0_i32 = arith.constant 0 : i32
    %c0_i32_0 = arith.constant 0 : i32
    return %arg0, %c0_i32 : i32, i32
  }
}

</mosaic_0001>

<bundles_post_ra>
// kernel: tpu_custom_call.1
= control target key start
LH: loop header
LB: loop body
LE: loop exit
PB: predicated region body
PF: predicated region fallthrough
CT: control target
= control target key end

     0   :  { %6 = vsyncpa [#allocation3], 0  ;;  %s179_s0 = inlined_call_operand.hbm [shape: f32[16,32], index: 0, kind: input, shape index: {}]   ;;  %s180_s1 = inlined_call_operand.hbm [shape: f32[16,32], index: 1, kind: output, shape index: {}]  }
   0x1   :  { %7 = vsyncpa [#allocation4], 0  ;;  %s129_s6 = smov [#allocation2]   ;;  %s81_s10 = scalar_lea.hbm %s179_s0, 256 }
   0x2   :  { %s13_s7 = sshll.u32 %s129_s6, 4  ;;  %p82_p0 = scmp.ne.s32.totalorder %s179_s0, %s81_s10  ;;  %s14_s7 = int_to_ptr.vmem [resolvable:$true] %s13_s7 }
   0x3   :  { %p85_p1 = scmp.lt.u32.totalorder %s81_s10, %s179_s0 }
   0x5   :  { %p87_p2 = pnand %p85_p1, %p82_p0 }
   0x7   :  { %90 = shalt.err (!%p87_p2)
}
   0x8   :  { %s91_s15 = scalar_lea.vmem %s14_s7, 256  ;;  %p96_p4 = scmp.lt.s32.totalorder %s14_s7, %s14_s7 }
   0x9   :  { %p92_p3 = scmp.ne.s32.totalorder %s14_s7, %s91_s15  ;;  %p97_p5 = scmp.lt.s32.totalorder %s91_s15, %s91_s15 }
   0xb   :  { %p98_p6 = por %p97_p5, %p96_p4 }
   0xd   :  { %p99_p7 = pnand %p98_p6, %p92_p3 }
   0xf   :  { %102 = shalt.err (!%p99_p7)
}
  0x10   :  { %s130_s16 = smov 128   ;;  %s131_s17 = smov 8  }
  0x11   :  { %19 = dma.hbm_to_vmem [thread:$0]  %s179_s0, 256, %s14_s7, [#allocation3], %s130_s16, %s130_s16, %s131_s17  }
  0x12   :  { %125 = dma.done.wait [#allocation3], 256  }
  0x13   :  { %126 = vsyncadd [#allocation3], 4294967040  ;;  %vm25_vm0 = vcmask 261120   ;;  %v23_v0 = vld [vmem:[#allocation2] sm:$0xff]  ;;  %v24_v1 = vld [vmem:[#allocation2 + $0x8] sm:$0xff]  ;;  %s132_s0 = smov [#allocation5]  }
  0x14   :  { %v26_v2 = vsel %vm25_vm0, %v23_v0, -inf  ;;  %v29_v3 = vsel %vm25_vm0, %v24_v1, -inf  ;;  %s57_s20 = sshll.u32 %s132_s0, 4  ;;  %s58_s20 = int_to_ptr.vmem [resolvable:$true] %s57_s20 }
  0x15   :  { %27 = vmax.xlane.f32.xlu0 %v26_v2  ;;  %s103_s21 = scalar_lea.vmem %s58_s20, 256  ;;  %p108_p9 = scmp.lt.s32.totalorder %s58_s20, %s58_s20 }
  0x16   :  { %p104_p8 = scmp.ne.s32.totalorder %s58_s20, %s103_s21  ;;  %p109_p10 = scmp.lt.s32.totalorder %s103_s21, %s103_s21 }
  0x18   :  { %p110_p11 = por %p109_p10, %p108_p9 }
  0x19   :  { %30 = vmax.xlane.f32.xlu0 %v29_v3 }
  0x1a   :  { %p111_p12 = pnand %p110_p11, %p104_p8 }
  0xa2   :  { %v28_v4 = vpop.xlane.xlu0 %27 }
  0xa3   :  { %v32_v5 = vsub.f32 %v23_v0, %v28_v4 }
  0xa5   :  { %v34_v6 = vmul.f32 1.442695, %v32_v5 }
  0xa6   :  { %v31_v7 = vpop.xlane.xlu0 %30 }
  0xa7   :  { %73 = vpow2.f32 %v34_v6  ;;  %v33_v8 = vsub.f32 %v24_v1, %v31_v7 }
  0xa9   :  { %v36_v9 = vmul.f32 1.442695, %v33_v8 }
  0xab   :  { %75 = vpow2.f32 %v36_v9 }
  0xb1   :  { %v74_v10 = vpop.eup %73 }
  0xb2   :  { %v38_v11 = vsel %vm25_vm0, %v74_v10, 0.0 }
  0xb3   :  { %39 = vadd.xlane.f32.xlu1 %v38_v11 }
  0xb5   :  { %v76_v12 = vpop.eup %75 }
  0xb6   :  { %v41_v13 = vsel %vm25_vm0, %v76_v12, 0.0 }
  0xb7   :  { %42 = vadd.xlane.f32.xlu1 %v41_v13 }
 0x140   :  { %v40_v14 = vpop.xlane.xlu1 %39 }
 0x141   :  { %77 = vlog2.f32 %v40_v14 }
 0x144   :  { %v43_v15 = vpop.xlane.xlu1 %42 }
 0x145   :  { %79 = vlog2.f32 %v43_v15 }
 0x14b   :  { %v78_v16 = vpop.eup %77 }
 0x14c   :  { %v45_v17 = vmul.f32 0.6931472, %v78_v16 }
 0x14e   :  { %v48_v18 = vsub.f32 %v32_v5, %v45_v17 }
 0x14f   :  { %v80_v19 = vpop.eup %79 }
 0x150   :  { %50 = vst.msk [vmem:[#allocation5] sm:$0xff] %vm25_vm0, %v48_v18  ;;  %v47_v20 = vmul.f32 0.6931472, %v80_v19 }
 0x152   :  { %v49_v21 = vsub.f32 %v33_v8, %v47_v20 }
 0x154   :  { %51 = vst.msk [vmem:[#allocation5 + $0x8] sm:$0xff] %vm25_vm0, %v49_v21 }
 0x155   :  { %114 = shalt.err (!%p111_p12)
}
 0x156   :  { %s115_s24 = scalar_lea.hbm %s180_s1, 256 }
 0x157   :  { %p116_p13 = scmp.ne.s32.totalorder %s180_s1, %s115_s24  ;;  %p119_p0 = scmp.lt.u32.totalorder %s115_s24, %s180_s1 }
 0x159   :  { %p121_p1 = pnand %p119_p0, %p116_p13 }
 0x15b   :  { %124 = shalt.err (!%p121_p1)
}
 0x15c   :  { %63 = dma.vmem_to_hbm [thread:$0]  %s58_s20, 256, %s180_s1, [#allocation4], %s130_s16, %s130_s16, %s131_s17  }
 0x15d   :  { %127 = dma.done.wait [#allocation4], 256  }
 0x15e   :  { %128 = vsyncadd [#allocation4], 4294967040 }
 0x15f   :  { %67 = vsyncpa [#allocation3], 1 }
 0x160   :  { %68 = vsyncpa [#allocation4], 1 }

</bundles_post_ra>
